<compile_context>
chip_gen: v5e
topology: v5e:2x2
jax: 0.10.0
libtpu: 0.0.40
codegen_flags: <defaults>
</compile_context>

<pallas_src>
import functools

import jax
import jax.numpy as jnp
from jax.experimental import pallas as pl
from jax.experimental.pallas import tpu as pltpu


def _complex_linear_kernel(x_ref, w_ref, b_ref, y_ref, *, activation):
    # x_ref: (TM, 2*C_in)   w_ref: (2*C_in, N_pad)   b_ref: (1, N_pad)   y_ref: (TM, N_pad)
    y = jnp.dot(x_ref[...], w_ref[...], preferred_element_type=jnp.float32)
    y = y + b_ref[...]                       # broadcasts over rows
    if activation == "relu":
        y = jnp.maximum(y, 0.0)
    elif activation == "sigmoid":
        y = jax.nn.sigmoid(y)
    y_ref[...] = y.astype(y_ref.dtype)


def _choose_row_tile(m, k_stacked, n_pad, *, budget_bytes=24 << 20, max_tile=8192):
    """Pick the largest row tile that keeps double-buffered tiles + resident weights in budget."""
    resident = 2 * 4 * (k_stacked * n_pad + n_pad)      # weights + bias (assume 2 buffers)
    per_row = 2 * 4 * (k_stacked + n_pad)                # input row + output row, 2 buffers
    avail = budget_bytes - resident
    tm = max(avail // per_row, 8) if avail > 0 else 8
    tm = min(tm, max_tile)
    if tm >= m:
        return m                                         # single full-extent block
    return max((tm // 8) * 8, 8)


def complex_linear(x, wr, wi, br, bi, *, activation="relu"):
    """Complex_Linear forward.

    x:  complex64, shape (..., C_in)
    wr, wi: (C_out, C_in) real weights of fc_r / fc_i
    br, bi: (C_out,) real biases of fc_r / fc_i
    returns complex64, shape (..., C_out)
    """
    *lead, c_in = x.shape
    c_out = wr.shape[0]
    m = 1
    for d in lead:
        m *= d

    # --- single stacked input stream: [x.real | x.imag] -> (M, 2*C_in) f32 (one fused pass)
    xr = jnp.real(x).astype(jnp.float32)
    xi = jnp.imag(x).astype(jnp.float32)
    x2 = jnp.concatenate([xr, xi], axis=-1).reshape(m, 2 * c_in)

    # --- stacked weight (2*C_in, 2*C_out) and combined bias (tiny one-time wrapper cost)
    wrt = wr.astype(jnp.float32).T                       # (C_in, C_out)
    wit = wi.astype(jnp.float32).T
    w_top = jnp.concatenate([wrt, wit], axis=1)          # multiplies x.real
    w_bot = jnp.concatenate([-wit, wrt], axis=1)         # multiplies x.imag
    w_full = jnp.concatenate([w_top, w_bot], axis=0)     # (2*C_in, 2*C_out)
    b_full = jnp.concatenate([br - bi, br + bi]).astype(jnp.float32)

    # --- lane-dense output: pad stacked width up to a multiple of 128 lanes
    n = 2 * c_out
    n_pad = ((n + 127) // 128) * 128
    if n_pad != n:
        w_full = jnp.pad(w_full, ((0, 0), (0, n_pad - n)))
        b_full = jnp.pad(b_full, (0, n_pad - n))
    b_full = b_full.reshape(1, n_pad)

    k_stacked = 2 * c_in
    tm = _choose_row_tile(m, k_stacked, n_pad)
    grid = (pl.cdiv(m, tm),)

    kernel = functools.partial(_complex_linear_kernel, activation=activation)

    y = pl.pallas_call(
        kernel,
        out_shape=jax.ShapeDtypeStruct((m, n_pad), jnp.float32),
        grid_spec=pltpu.PrefetchScalarGridSpec(
            num_scalar_prefetch=0,
            grid=grid,
            in_specs=[
                pl.BlockSpec((tm, k_stacked), lambda i: (i, 0)),      # x tile (streamed)
                pl.BlockSpec((k_stacked, n_pad), lambda i: (0, 0)),   # stacked W (resident)
                pl.BlockSpec((1, n_pad), lambda i: (0, 0)),           # bias (resident)
            ],
            out_specs=pl.BlockSpec((tm, n_pad), lambda i: (i, 0)),
        ),
        compiler_params=pltpu.CompilerParams(
            dimension_semantics=("parallel",),        # shard row tiles across v7x TCs
            vmem_limit_bytes=32 * 1024 * 1024,        # safe on v5e/v6e/v7x; > default on v5e
        ),
    )(x2, w_full, b_full)

    # --- drop lane padding, recombine planes -> complex64 (single fused XLA pass)
    out = jax.lax.complex(y[:, :c_out], y[:, c_out:2 * c_out])
    return out.reshape(*lead, c_out).astype(jnp.complex64)


def _reference(x, wr, wi, br, bi, activation):
    hi = jax.lax.Precision.HIGHEST
    xr, xi = jnp.real(x), jnp.imag(x)
    fr = lambda t: jnp.einsum("...c,oc->...o", t, wr, precision=hi) + br
    fi = lambda t: jnp.einsum("...c,oc->...o", t, wi, precision=hi) + bi
    rr = fr(xr) - fi(xi)
    ri = fr(xi) + fi(xr)
    if activation == "relu":
        rr, ri = jnp.maximum(rr, 0.0), jnp.maximum(ri, 0.0)
    elif activation == "sigmoid":
        rr, ri = jax.nn.sigmoid(rr), jax.nn.sigmoid(ri)
    return (rr + 1j * ri).astype(jnp.complex64)


if __name__ == "__main__":
    key = jax.random.PRNGKey(0)
    B, S, C_in, C_out = 2, 8, 32, 16
    k1, k2, k3, k4, k5, k6 = jax.random.split(key, 6)

    xr = jax.random.normal(k1, (B, S, C_in), jnp.float32)
    xi = jax.random.normal(k2, (B, S, C_in), jnp.float32)
    x = (xr + 1j * xi).astype(jnp.complex64)

    # ComplexLinear parameters: fc_r (wr, br) and fc_i (wi, bi)
    wr = jax.random.normal(k3, (C_out, C_in), jnp.float32) * 0.1
    wi = jax.random.normal(k4, (C_out, C_in), jnp.float32) * 0.1
    br = jax.random.normal(k5, (C_out,), jnp.float32) * 0.1
    bi = jax.random.normal(k6, (C_out,), jnp.float32) * 0.1

    ok = True
    for act in ("relu", "sigmoid", "None"):
        out = complex_linear(x, wr, wi, br, bi, activation=act)
        out = jax.block_until_ready(out)
        ref = _reference(x, wr, wi, br, bi, act)
        assert out.shape == (B, S, C_out)
        ok &= bool(jnp.allclose(out, ref, atol=1e-3, rtol=1e-3))

    assert ok, "Pallas kernel mismatch vs reference"
    print("KERNEL_OK")
</pallas_src>

<mosaic_0001>
module attributes {stable_mosaic.version = 11 : i64} {
  func.func @_complex_linear_kernel(%arg0: i32, %arg1: memref<16x64xf32, #tpu.memory_space<vmem>>, %arg2: memref<64x128xf32, #tpu.memory_space<vmem>>, %arg3: memref<1x128xf32, #tpu.memory_space<vmem>>, %arg4: memref<16x128xf32, #tpu.memory_space<vmem>>) attributes {dimension_semantics = [#tpu.dimension_semantics<parallel>], iteration_bounds = array<i64: 1>, scalar_prefetch = 0 : i64, scratch_operands = 0 : i64, tpu.core_type = #tpu.core_type<tc>, window_params = [{transform_indices = @transform_0, window_bounds = array<i64: 16, 64>}, {pipeline_mode = #tpu.pipeline_mode<synchronous>, transform_indices = @transform_1, window_bounds = array<i64: 64, 128>}, {pipeline_mode = #tpu.pipeline_mode<synchronous>, transform_indices = @transform_2, window_bounds = array<i64: 1, 128>}, {transform_indices = @transform_3, window_bounds = array<i64: 16, 128>}]} {
    %c0 = arith.constant 0 : index
    %c0_0 = arith.constant 0 : index
    %0 = vector.load %arg1[%c0, %c0_0] : memref<16x64xf32, #tpu.memory_space<vmem>>, vector<16x64xf32>
    %c0_1 = arith.constant 0 : index
    %c0_2 = arith.constant 0 : index
    %1 = vector.load %arg2[%c0_1, %c0_2] : memref<64x128xf32, #tpu.memory_space<vmem>>, vector<64x128xf32>
    %cst = arith.constant dense<0.000000e+00> : vector<16x128xf32>
    %2 = tpu.matmul %0, %1, %cst {dimension_numbers = #tpu.dot_dimension_numbers<[1], [0], [0], [1], [0, 0, 1, 1], [], []>} : vector<16x64xf32>, vector<64x128xf32>, vector<16x128xf32> -> vector<16x128xf32>
    %c0_3 = arith.constant 0 : index
    %c0_4 = arith.constant 0 : index
    %3 = vector.load %arg3[%c0_3, %c0_4] : memref<1x128xf32, #tpu.memory_space<vmem>>, vector<1x128xf32>
    %4 = vector.broadcast %3 : vector<1x128xf32> to vector<16x128xf32>
    %5 = arith.addf %2, %4 : vector<16x128xf32>
    %cst_5 = arith.constant 0.000000e+00 : f32
    %6 = vector.broadcast %cst_5 : f32 to vector<16x128xf32>
    %7 = arith.maximumf %5, %6 : vector<16x128xf32>
    %c0_6 = arith.constant 0 : index
    %c0_7 = arith.constant 0 : index
    %8 = vector.load %arg4[%c0_6, %c0_7] : memref<16x128xf32, #tpu.memory_space<vmem>>, vector<16x128xf32>
    tpu.vector_store %arg4[%c0_6, %c0_7], %7 {strides = array<i32>} : memref<16x128xf32, #tpu.memory_space<vmem>>, vector<16x128xf32>,
    return
  }
  func.func @transform_0(%arg0: i32) -> (i32, i32) {
    %c0_i32 = arith.constant 0 : i32
    %c0_i32_0 = arith.constant 0 : i32
    return %arg0, %c0_i32 : i32, i32
  }
  func.func @transform_1(%arg0: i32) -> (i32, i32) {
    %c0_i32 = arith.constant 0 : i32
    %c0_i32_0 = arith.constant 0 : i32
    %c0_i32_1 = arith.constant 0 : i32
    return %c0_i32, %c0_i32_0 : i32, i32
  }
  func.func @transform_2(%arg0: i32) -> (i32, i32) {
    %c0_i32 = arith.constant 0 : i32
    %c0_i32_0 = arith.constant 0 : i32
    %c0_i32_1 = arith.constant 0 : i32
    return %c0_i32, %c0_i32_0 : i32, i32
  }
  func.func @transform_3(%arg0: i32) -> (i32, i32) {
    %c0_i32 = arith.constant 0 : i32
    %c0_i32_0 = arith.constant 0 : i32
    return %arg0, %c0_i32 : i32, i32
  }
}

</mosaic_0001>

<bundles_post_ra>
// kernel: tpu_custom_call.1
= control target key start
LH: loop header
LB: loop body
LE: loop exit
PB: predicated region body
PF: predicated region fallthrough
CT: control target
= control target key end

     0   :  { %8 = vsyncpa [#allocation3], 0  ;;  %s255_s0 = inlined_call_operand.hbm [shape: f32[16,64], index: 0, kind: input, shape index: {}]   ;;  %s256_s1 = inlined_call_operand.hbm [shape: f32[64,128], index: 1, kind: input, shape index: {}]   ;;  %s257_s2 = inlined_call_operand.vmem [shape: f32[1,128], index: 2, kind: input, shape index: {}]   ;;  %s258_s3 = inlined_call_operand.hbm [shape: f32[16,128], index: 3, kind: output, shape index: {}]  }
   0x1   :  { %9 = vsyncpa [#allocation6], 0 }
   0x2   :  { %10 = vsyncpa [#allocation4], 0  ;;  %s15_s14 = sshll.u32 %s255_s0, 4  ;;  %s209_s15 = smov [#allocation2]   ;;  %s16_s14 = int_to_ptr.hbm [resolvable:$true] %s15_s14 }
   0x3   :  { %s17_s16 = sshll.u32 %s209_s15, 4  ;;  %s28_s19 = sshll.u32 %s256_s1, 4  ;;  %s18_s16 = int_to_ptr.vmem [resolvable:$true] %s17_s16  ;;  %s29_s19 = int_to_ptr.hbm [resolvable:$true] %s28_s19 }
   0x4   :  { %s210_s20 = smov 128   ;;  %s211_s21 = smov 8  }
   0x5   :  { %23 = dma.hbm_to_vmem [thread:$0]  %s16_s14, 256, %s18_s16, [#allocation3], %s210_s20, %s210_s20, %s211_s21  }
   0x6   :  { %s212_s22 = smov [#allocation5]  }
   0x7   :  { %s30_s23 = sshll.u32 %s212_s22, 4  ;;  %s31_s23 = int_to_ptr.vmem [resolvable:$true] %s30_s23 }
   0x8   :  { %36 = dma.hbm_to_vmem [thread:$0]  %s29_s19, 1024, %s31_s23, [#allocation6], %s210_s20, %s210_s20, %s211_s21  }
   0x9   :  { %203 = dma.done.wait [#allocation3], 256  }
   0xa   :  { %204 = vsyncadd [#allocation3], 4294967040 }
   0xb   :  { %205 = dma.done.wait [#allocation6], 1024  }
   0xc   :  { %206 = vsyncadd [#allocation6], 4294966272  ;;  %v56_v0 = vld [vmem:[#allocation5 + $0x38] sm:$0xff]  ;;  %v55_v1 = vld [vmem:[#allocation5 + $0x30] sm:$0xff]  ;;  %vm61_vm0 = vcmask 523264   ;;  %s213_s24 = smov [#allocation7]  }
   0xd   :  { %76 = vmatpush.msra.mxu0 %v56_v0  ;;  %117 = vmatpush.msra.mxu1 %v56_v0  ;;  %v54_v2 = vld [vmem:[#allocation5 + $0x28] sm:$0xff]  ;;  %v53_v3 = vld [vmem:[#allocation5 + $0x20] sm:$0xff]  ;;  %v52_v4 = vld [vmem:[#allocation5 + $0x18] sm:$0xff]  ;;  %s99_s25 = sshll.u32 %s213_s24, 4  ;;  %s101_s28 = sshll.u32 %s258_s3, 4  ;;  %s100_s25 = int_to_ptr.vmem [resolvable:$true] %s99_s25  ;;  %s102_s28 = int_to_ptr.hbm [resolvable:$true] %s101_s28 }
   0xe   :  { %v51_v5 = vld [vmem:[#allocation5 + $0x10] sm:$0xff]  ;;  %v50_v6 = vld [vmem:[#allocation5 + $0x8] sm:$0xff]  ;;  %v49_v7 = vld [vmem:[#allocation5] sm:$0xff] }
   0xf   :  { %77 = vmatpush.msra.mxu0 %v55_v1  ;;  %118 = vmatpush.msra.mxu1 %v55_v1  ;;  %v47_v8 = vld [vmem:[#allocation2] sm:$0xff]  ;;  %v48_v9 = vld [vmem:[#allocation2 + $0x8] sm:$0xff] }
  0x10   :  { %v130_v10 = vld [vmem:[%s257_s2] ss:$0 sm:$0xff] }
  0x11   :  { %78 = vmatpush.msra.mxu0 %v54_v2  ;;  %119 = vmatpush.msra.mxu1 %v54_v2 }
  0x13   :  { %79 = vmatpush.msra.mxu0 %v53_v3  ;;  %120 = vmatpush.msra.mxu1 %v53_v3 }
  0x15   :  { %80 = vmatpush.msra.mxu0 %v52_v4  ;;  %121 = vmatpush.msra.mxu1 %v52_v4 }
  0x17   :  { %81 = vmatpush.msra.mxu0 %v51_v5  ;;  %122 = vmatpush.msra.mxu1 %v51_v5 }
  0x19   :  { %82 = vmatpush.msra.mxu0 %v50_v6  ;;  %123 = vmatpush.msra.mxu1 %v50_v6 }
  0x1b   :  { %83 = vmatpush.msra.mxu0 %v49_v7  ;;  %124 = vmatpush.msra.mxu1 %v49_v7 }
  0x1c   :  { %115 = vmatmul.msk.f32.vlgmr.msra.gmra.mxu0 %vm61_vm0, %v47_v8  ;;  %116 = vmatmul.msk.f32.vlgmr.msra.gmra.mxu1 %vm61_vm0, %v48_v9 }
  0x99   :  { %v85_v11 = vpop.f32.mrf.mxu0  ;;  %v88_v12 = vpop.f32.mrf.mxu1 }
  0x9a   :  { %v86_v13 = vadd.f32 %v130_v10, %v85_v11  ;;  %v89_v14 = vadd.f32 %v130_v10, %v88_v12 }
  0x9c   :  { %v91_v15 = vmax.f32 %v86_v13, 0.0  ;;  %v92_v16 = vmax.f32 %v89_v14, 0.0 }
  0x9e   :  { %93 = vst [vmem:[#allocation7] sm:$0xff] %v91_v15 }
  0x9f   :  { %94 = vst [vmem:[#allocation7 + $0x8] sm:$0xff] %v92_v16 }
  0xa0   :  { %107 = dma.vmem_to_hbm [thread:$0]  %s100_s25, 256, %s102_s28, [#allocation4], %s210_s20, %s210_s20, %s211_s21  }
  0xa1   :  { %207 = dma.done.wait [#allocation4], 256  }
  0xa2   :  { %208 = vsyncadd [#allocation4], 4294967040 }
  0xa3   :  { %112 = vsyncpa [#allocation3], 1 }
  0xa4   :  { %113 = vsyncpa [#allocation6], 1 }
  0xa5   :  { %114 = vsyncpa [#allocation4], 1 }

</bundles_post_ra>
